<compile_context>
chip_gen: v5e
topology: v5e:2x2
jax: 0.10.0
libtpu: 0.0.40
codegen_flags: <defaults>
</compile_context>

<pallas_src>
import functools
import math

import jax
import jax.numpy as jnp
import numpy as np
from jax.experimental import pallas as pl
from jax.experimental.pallas import tpu as pltpu

_LANE = 128
_SUBLANE = 8


def _round_up(x, m):
    return ((x + m - 1) // m) * m


def _vmem_limit_bytes():
    # Explicit scoped-VMEM limit: physical capacity minus headroom. Default
    # scoped limits (16/32 MiB) are too small at realistic D (~10k).
    try:
        cap = int(pltpu.get_tpu_info().vmem_capacity_bytes)
    except Exception:
        cap = 64 * 1024 * 1024
    return int(max(cap - 16 * 1024 * 1024, 32 * 1024 * 1024))


def _encode_stats_kernel(x_ref, w_ref, sum_ref, rec_ref, *, n_true):
    """Pass 1: encode tile, fractional-norm reciprocal, masked batch sum."""
    tile = pl.program_id(0)
    tile_n = x_ref.shape[0]

    # fused encode: bias already folded into the trailing ones-column of x /
    # last row of w (bf16 operands, f32 accumulation).
    h = jnp.dot(x_ref[...], w_ref[...], preferred_element_type=jnp.float32)

    # fractional norm, p = 1.5:  ||h||_1.5 = (sum |h|^1.5)^(2/3)
    a = jnp.abs(h)
    s = jnp.sum(a * jnp.sqrt(a), axis=1, keepdims=True)      # sum |h|^1.5
    s = jnp.maximum(s, 1e-30)                                 # guard log(0)
    p_norm = jnp.exp(jnp.log(s) * (2.0 / 3.0))                # s^(2/3)
    rec = pl.reciprocal(p_norm + 1e-8, approx=True)           # EUP, not VALU div
    rec_ref[...] = rec                                        # cache for pass 2

    hpn = h * rec

    # Masked batch-sum via a small matmul (MXU) instead of an XLU axis-0 reduce.
    # Only sublane 0 of the mask is live, so output rows 1..7 are exact zeros
    # and the wrapper can simply sum all rows.
    sub = jax.lax.broadcasted_iota(jnp.int32, (_SUBLANE, tile_n), 0)
    col = jax.lax.broadcasted_iota(jnp.int32, (_SUBLANE, tile_n), 1)
    mask = jnp.where((sub == 0) & (tile * tile_n + col < n_true), 1.0, 0.0)
    sum_ref[...] = jnp.dot(mask, hpn, preferred_element_type=jnp.float32)


def _finalize_kernel(x_ref, w_ref, rec_ref, mean_ref, wm_ref, o_ref):
    """Pass 2: re-encode, apply cached p-norm, center, L2-normalize, classify."""
    h = jnp.dot(x_ref[...], w_ref[...], preferred_element_type=jnp.float32)
    hc = h * rec_ref[...] - mean_ref[...]                     # jacobi center
    l2 = jnp.sqrt(jnp.sum(hc * hc, axis=1, keepdims=True)) + 1e-6
    hn = hc * pl.reciprocal(l2, approx=True)
    # classifier head (temperature already folded into wm_ref), lane-dense out
    o_ref[...] = jnp.dot(hn.astype(wm_ref.dtype), wm_ref[...],
                         preferred_element_type=jnp.float32)


def fuse_onlinehd_params(we, be, wm, temp, q, had, p):
    """One-time algebraic fusion of the OnlineHD parameters.

    Call this ONCE and reuse the results across batch calls (Q @ H @ P is
    O(D^3) and must not be recomputed per invocation).
    """
    proj = q @ had @ p                                   # [D, D]
    w_fused = we.T @ proj                                # [F, D]
    b_fused = be[None, :] @ proj                         # [1, D]
    # bias folded into the matmul via a ones column appended to x
    w_aug = jnp.concatenate([w_fused, b_fused], axis=0).astype(jnp.bfloat16)

    c, _ = wm.shape
    c_pad = _round_up(c, _LANE)                          # lane-dense classifier
    wm_scaled = wm.T / temp[None, :]                     # temperature folded in
    wm_scaled = jnp.pad(wm_scaled, ((0, 0), (0, c_pad - c))).astype(jnp.bfloat16)
    return w_aug, wm_scaled, c


@functools.partial(jax.jit, static_argnames=("n_classes", "tile_n"))
def onlinehd_scores(x, w_aug, wm_scaled, *, n_classes, tile_n=256):
    """x: [N, F] f32, fused params from fuse_onlinehd_params -> scores [N, C]."""
    n, f = x.shape
    f_aug, d = w_aug.shape
    assert f_aug == f + 1
    c_pad = wm_scaled.shape[1]

    # batch tiling (tile_n should be sized against VMEM: single-buffered bf16
    # weights + the (tile_n, D) f32 temporaries must stay under the limit)
    tile_n = max(_SUBLANE, _round_up(min(tile_n, n), _SUBLANE))
    n_pad = _round_up(n, tile_n)
    n_tiles = n_pad // tile_n

    # ones column folds the encoder bias into the matmul; padded rows stay zero
    x_aug = jnp.concatenate([x, jnp.ones((n, 1), x.dtype)], axis=1)
    x_aug = jnp.pad(x_aug, ((0, n_pad - n), (0, 0))).astype(jnp.bfloat16)

    vmem_limit = _vmem_limit_bytes()
    const = pl.Buffered(1)          # constant-index weights: single-buffered

    # ---- pass 1: per-tile masked sums + cached fractional-norm reciprocals ----
    sums, rec = pl.pallas_call(
        functools.partial(_encode_stats_kernel, n_true=n),
        out_shape=(
            jax.ShapeDtypeStruct((n_tiles * _SUBLANE, d), jnp.float32),
            jax.ShapeDtypeStruct((n_pad, 1), jnp.float32),
        ),
        grid_spec=pltpu.PrefetchScalarGridSpec(
            num_scalar_prefetch=0,
            grid=(n_tiles,),
            in_specs=[
                pl.BlockSpec((tile_n, f_aug), lambda i: (i, 0)),
                pl.BlockSpec((f_aug, d), lambda i: (0, 0), pipeline_mode=const),
            ],
            out_specs=(
                pl.BlockSpec((_SUBLANE, d), lambda i: (i, 0)),
                pl.BlockSpec((tile_n, 1), lambda i: (i, 0)),
            ),
        ),
        compiler_params=pltpu.CompilerParams(
            dimension_semantics=("parallel",),
            vmem_limit_bytes=vmem_limit,
        ),
        cost_estimate=pl.CostEstimate(
            flops=2 * n_pad * f_aug * d + 2 * _SUBLANE * n_pad * d,
            transcendentals=n_pad * d + 3 * n_pad,
            bytes_accessed=2 * (n_pad * f_aug + f_aug * d)
            + 4 * (n_tiles * _SUBLANE * d + n_pad),
        ),
    )(x_aug, w_aug)

    # global batch mean of the fractional-normalized codes (padded rows masked)
    mean = jnp.sum(sums, axis=0, keepdims=True) * (1.0 / n)   # [1, D] f32

    # ---- pass 2: re-encode, center, L2-normalize, classify ----
    scores = pl.pallas_call(
        _finalize_kernel,
        out_shape=jax.ShapeDtypeStruct((n_pad, c_pad), jnp.float32),
        grid_spec=pltpu.PrefetchScalarGridSpec(
            num_scalar_prefetch=0,
            grid=(n_tiles,),
            in_specs=[
                pl.BlockSpec((tile_n, f_aug), lambda i: (i, 0)),
                pl.BlockSpec((f_aug, d), lambda i: (0, 0), pipeline_mode=const),
                pl.BlockSpec((tile_n, 1), lambda i: (i, 0)),
                pl.BlockSpec((1, d), lambda i: (0, 0), pipeline_mode=const),
                pl.BlockSpec((d, c_pad), lambda i: (0, 0), pipeline_mode=const),
            ],
            out_specs=pl.BlockSpec((tile_n, c_pad), lambda i: (i, 0)),
        ),
        compiler_params=pltpu.CompilerParams(
            dimension_semantics=("parallel",),
            vmem_limit_bytes=vmem_limit,
        ),
        cost_estimate=pl.CostEstimate(
            flops=2 * n_pad * f_aug * d + 2 * n_pad * d * c_pad,
            transcendentals=2 * n_pad,
            bytes_accessed=2 * (n_pad * f_aug + f_aug * d + d * c_pad)
            + 4 * (n_pad + d + n_pad * c_pad),
        ),
    )(x_aug, w_aug, rec, mean, wm_scaled)

    return scores[:n, :n_classes]


def _hadamard(n):
    h = np.array([[1.0]], dtype=np.float32)
    while h.shape[0] < n:
        h = np.block([[h, h], [h, -h]])
    return h


def make_params(classes, features, dim, key):
    """Deterministic parameter construction mirroring OnlineHD.__init__ shapes."""
    k_we, k_be, k_wm, k_q, k_a = jax.random.split(key, 5)

    # nn.Linear(features, dim): weight [dim, features], bias [dim]
    we = jax.random.normal(k_we, (dim, features), jnp.float32) * (
        1.0 / math.sqrt(features))
    be = jax.random.normal(k_be, (dim,), jnp.float32) * 0.01

    # nn.Linear(dim, classes, bias=False): weight [classes, dim]
    wm = jax.random.normal(k_wm, (classes, dim), jnp.float32) * (
        1.0 / math.sqrt(dim))

    # temperature parameter: ones(classes)
    temp = jnp.ones((classes,), jnp.float32)

    # random orthogonal matrix via QR
    q, _ = jnp.linalg.qr(jax.random.normal(k_q, (dim, dim), jnp.float32))

    # Hadamard matrix (dim power of 2 here), scaled by 1/sqrt(dim)
    had = jnp.asarray(_hadamard(2 ** (dim - 1).bit_length())[:dim, :dim],
                      jnp.float32) / math.sqrt(dim)

    # null-space projection: P = I - A^T (A A^T)^+ A, A: [dim//4, dim]
    a = jax.random.normal(k_a, (dim // 4, dim), jnp.float32)
    p = jnp.eye(dim, dtype=jnp.float32) - a.T @ jnp.linalg.pinv(a @ a.T) @ a

    return we, be, wm, temp, q, had, p


def reference_forward(x, we, be, wm, temp, q, had, p):
    h = x @ we.T + be
    h = h @ q
    h = h @ had
    h = h @ p
    pn = jnp.sum(jnp.abs(h) ** 1.5, axis=1, keepdims=True) ** (1.0 / 1.5)
    h = h / (pn + 1e-8)
    h = h - jnp.mean(h, axis=0, keepdims=True)
    h = h / (jnp.linalg.norm(h, axis=1, keepdims=True) + 1e-6)
    return (h @ wm.T) / temp


if __name__ == "__main__":
    # small shapes; N deliberately NOT a multiple of the tile to exercise the
    # padded-row masking of the global-mean accumulation across multiple tiles.
    N, FEATURES, DIM, CLASSES = 80, 32, 128, 8

    key = jax.random.PRNGKey(0)
    k_x, k_p = jax.random.split(key)
    x = jax.random.normal(k_x, (N, FEATURES), jnp.float32)
    we, be, wm, temp, q, had, p = make_params(CLASSES, FEATURES, DIM, k_p)

    # one-time fusion, hoisted out of the per-batch call path
    w_aug, wm_scaled, n_classes = fuse_onlinehd_params(we, be, wm, temp, q, had, p)

    scores = onlinehd_scores(x, w_aug, wm_scaled, n_classes=n_classes, tile_n=32)
    scores = jax.block_until_ready(scores)

    ref = reference_forward(x, we, be, wm, temp, q, had, p)
    assert scores.shape == (N, CLASSES)
    err = float(jnp.max(jnp.abs(scores - ref)))
    # bf16 matmuls (f32 accumulation) + approx reciprocals -> looser tolerance
    assert jnp.allclose(scores, ref, atol=2.5e-2, rtol=2.5e-2), err

    print("KERNEL_OK")
</pallas_src>

<mosaic_0001>
module attributes {stable_mosaic.version = 11 : i64} {
  func.func @_encode_stats_kernel(%arg0: i32, %arg1: memref<32x33xbf16, #tpu.memory_space<vmem>>, %arg2: memref<33x128xbf16, #tpu.memory_space<vmem>>, %arg3: memref<8x128xf32, #tpu.memory_space<vmem>>, %arg4: memref<32x1xf32, #tpu.memory_space<vmem>>) attributes {dimension_semantics = [#tpu.dimension_semantics<parallel>], iteration_bounds = array<i64: 3>, scalar_prefetch = 0 : i64, scratch_operands = 0 : i64, tpu.core_type = #tpu.core_type<tc>, window_params = [{transform_indices = @transform_0, window_bounds = array<i64: 32, 33>}, {pipeline_mode = #tpu.pipeline_mode<synchronous>, transform_indices = @transform_1, window_bounds = array<i64: 33, 128>}, {transform_indices = @transform_2, window_bounds = array<i64: 8, 128>}, {transform_indices = @transform_3, window_bounds = array<i64: 32, 1>}]} {
    %c0 = arith.constant 0 : index
    %c0_0 = arith.constant 0 : index
    %0 = vector.load %arg1[%c0, %c0_0] : memref<32x33xbf16, #tpu.memory_space<vmem>>, vector<32x33xbf16>
    %c0_1 = arith.constant 0 : index
    %c0_2 = arith.constant 0 : index
    %1 = vector.load %arg2[%c0_1, %c0_2] : memref<33x128xbf16, #tpu.memory_space<vmem>>, vector<33x128xbf16>
    %cst = arith.constant dense<0.000000e+00> : vector<32x128xf32>
    %2 = tpu.matmul %0, %1, %cst {dimension_numbers = #tpu.dot_dimension_numbers<[1], [0], [0], [1], [0, 0, 1, 1], [], []>} : vector<32x33xbf16>, vector<33x128xbf16>, vector<32x128xf32> -> vector<32x128xf32>
    %3 = math.absf %2 : vector<32x128xf32>
    %4 = math.sqrt %3 : vector<32x128xf32>
    %5 = arith.mulf %3, %4 : vector<32x128xf32>
    %cst_3 = arith.constant dense<0.000000e+00> : vector<32xf32>
    %6 = vector.multi_reduction <add>, %5, %cst_3 [1] : vector<32x128xf32> to vector<32xf32>
    %7 = vector.shape_cast %6 : vector<32xf32> to vector<32x1xf32>
    %cst_4 = arith.constant 1.000000e-30 : f32
    %8 = vector.broadcast %cst_4 : f32 to vector<32x1xf32>
    %9 = arith.maximumf %7, %8 : vector<32x1xf32>
    %10 = math.log %9 : vector<32x1xf32>
    %cst_5 = arith.constant 0.666666686 : f32
    %11 = vector.broadcast %cst_5 : f32 to vector<32x1xf32>
    %12 = arith.mulf %10, %11 : vector<32x1xf32>
    %13 = math.exp %12 : vector<32x1xf32>
    %cst_6 = arith.constant 9.99999993E-9 : f32
    %14 = vector.broadcast %cst_6 : f32 to vector<32x1xf32>
    %15 = arith.addf %13, %14 : vector<32x1xf32>
    %16 = tpu.reciprocal %15 {approx = true} : vector<32x1xf32> -> vector<32x1xf32>
    %c0_7 = arith.constant 0 : index
    %c0_8 = arith.constant 0 : index
    %17 = vector.load %arg4[%c0_7, %c0_8] : memref<32x1xf32, #tpu.memory_space<vmem>>, vector<32x1xf32>
    tpu.vector_store %arg4[%c0_7, %c0_8], %16 {strides = array<i32>} : memref<32x1xf32, #tpu.memory_space<vmem>>, vector<32x1xf32>,
    %18 = vector.broadcast %16 : vector<32x1xf32> to vector<32x128xf32>
    %19 = arith.mulf %2, %18 : vector<32x128xf32>
    %20 = tpu.iota {dimensions = array<i32: 0>} : vector<8x32xi32>
    %21 = tpu.iota {dimensions = array<i32: 1>} : vector<8x32xi32>
    %c0_i32 = arith.constant 0 : i32
    %22 = vector.broadcast %c0_i32 : i32 to vector<8x32xi32>
    %23 = arith.cmpi eq, %20, %22 : vector<8x32xi32>
    %c32_i32 = arith.constant 32 : i32
    %24 = arith.muli %arg0, %c32_i32 : i32
    %25 = vector.broadcast %24 : i32 to vector<8x32xi32>
    %26 = arith.addi %25, %21 : vector<8x32xi32>
    %c80_i32 = arith.constant 80 : i32
    %27 = vector.broadcast %c80_i32 : i32 to vector<8x32xi32>
    %28 = arith.cmpi slt, %26, %27 : vector<8x32xi32>
    %29 = arith.andi %23, %28 : vector<8x32xi1>
    %cst_9 = arith.constant 1.000000e+00 : f32
    %cst_10 = arith.constant 0.000000e+00 : f32
    %30 = vector.broadcast %cst_9 : f32 to vector<8x32xf32>
    %31 = vector.broadcast %cst_10 : f32 to vector<8x32xf32>
    %32 = arith.select %29, %30, %31 : vector<8x32xi1>, vector<8x32xf32>
    %cst_11 = arith.constant dense<0.000000e+00> : vector<8x128xf32>
    %33 = tpu.matmul %32, %19, %cst_11 {dimension_numbers = #tpu.dot_dimension_numbers<[1], [0], [0], [1], [0, 0, 1, 1], [], []>} : vector<8x32xf32>, vector<32x128xf32>, vector<8x128xf32> -> vector<8x128xf32>
    %c0_12 = arith.constant 0 : index
    %c0_13 = arith.constant 0 : index
    %34 = vector.load %arg3[%c0_12, %c0_13] : memref<8x128xf32, #tpu.memory_space<vmem>>, vector<8x128xf32>
    tpu.vector_store %arg3[%c0_12, %c0_13], %33 {strides = array<i32>} : memref<8x128xf32, #tpu.memory_space<vmem>>, vector<8x128xf32>,
    return
  }
  func.func @transform_0(%arg0: i32) -> (i32, i32) {
    %c0_i32 = arith.constant 0 : i32
    %c0_i32_0 = arith.constant 0 : i32
    return %arg0, %c0_i32 : i32, i32
  }
  func.func @transform_1(%arg0: i32) -> (i32, i32) {
    %c0_i32 = arith.constant 0 : i32
    %c0_i32_0 = arith.constant 0 : i32
    %c0_i32_1 = arith.constant 0 : i32
    return %c0_i32, %c0_i32_0 : i32, i32
  }
  func.func @transform_2(%arg0: i32) -> (i32, i32) {
    %c0_i32 = arith.constant 0 : i32
    %c0_i32_0 = arith.constant 0 : i32
    return %arg0, %c0_i32 : i32, i32
  }
  func.func @transform_3(%arg0: i32) -> (i32, i32) {
    %c0_i32 = arith.constant 0 : i32
    %c0_i32_0 = arith.constant 0 : i32
    return %arg0, %c0_i32 : i32, i32
  }
}

module attributes {stable_mosaic.version = 11 : i64} {
  func.func @_finalize_kernel(%arg0: i32, %arg1: memref<32x33xbf16, #tpu.memory_space<vmem>>, %arg2: memref<33x128xbf16, #tpu.memory_space<vmem>>, %arg3: memref<32x1xf32, #tpu.memory_space<vmem>>, %arg4: memref<1x128xf32, #tpu.memory_space<vmem>>, %arg5: memref<128x128xbf16, #tpu.memory_space<vmem>>, %arg6: memref<32x128xf32, #tpu.memory_space<vmem>>) attributes {dimension_semantics = [#tpu.dimension_semantics<parallel>], iteration_bounds = array<i64: 3>, scalar_prefetch = 0 : i64, scratch_operands = 0 : i64, tpu.core_type = #tpu.core_type<tc>, window_params = [{transform_indices = @transform_0, window_bounds = array<i64: 32, 33>}, {pipeline_mode = #tpu.pipeline_mode<synchronous>, transform_indices = @transform_1, window_bounds = array<i64: 33, 128>}, {transform_indices = @transform_2, window_bounds = array<i64: 32, 1>}, {pipeline_mode = #tpu.pipeline_mode<synchronous>, transform_indices = @transform_3, window_bounds = array<i64: 1, 128>}, {pipeline_mode = #tpu.pipeline_mode<synchronous>, transform_indices = @transform_4, window_bounds = array<i64: 128, 128>}, {transform_indices = @transform_5, window_bounds = array<i64: 32, 128>}]} {
    %c0 = arith.constant 0 : index
    %c0_0 = arith.constant 0 : index
    %0 = vector.load %arg1[%c0, %c0_0] : memref<32x33xbf16, #tpu.memory_space<vmem>>, vector<32x33xbf16>
    %c0_1 = arith.constant 0 : index
    %c0_2 = arith.constant 0 : index
    %1 = vector.load %arg2[%c0_1, %c0_2] : memref<33x128xbf16, #tpu.memory_space<vmem>>, vector<33x128xbf16>
    %cst = arith.constant dense<0.000000e+00> : vector<32x128xf32>
    %2 = tpu.matmul %0, %1, %cst {dimension_numbers = #tpu.dot_dimension_numbers<[1], [0], [0], [1], [0, 0, 1, 1], [], []>} : vector<32x33xbf16>, vector<33x128xbf16>, vector<32x128xf32> -> vector<32x128xf32>
    %c0_3 = arith.constant 0 : index
    %c0_4 = arith.constant 0 : index
    %3 = vector.load %arg3[%c0_3, %c0_4] : memref<32x1xf32, #tpu.memory_space<vmem>>, vector<32x1xf32>
    %4 = vector.broadcast %3 : vector<32x1xf32> to vector<32x128xf32>
    %5 = arith.mulf %2, %4 : vector<32x128xf32>
    %c0_5 = arith.constant 0 : index
    %c0_6 = arith.constant 0 : index
    %6 = vector.load %arg4[%c0_5, %c0_6] : memref<1x128xf32, #tpu.memory_space<vmem>>, vector<1x128xf32>
    %7 = vector.broadcast %6 : vector<1x128xf32> to vector<32x128xf32>
    %8 = arith.subf %5, %7 : vector<32x128xf32>
    %9 = arith.mulf %8, %8 : vector<32x128xf32>
    %cst_7 = arith.constant dense<0.000000e+00> : vector<32xf32>
    %10 = vector.multi_reduction <add>, %9, %cst_7 [1] : vector<32x128xf32> to vector<32xf32>
    %11 = vector.shape_cast %10 : vector<32xf32> to vector<32x1xf32>
    %12 = math.sqrt %11 : vector<32x1xf32>
    %cst_8 = arith.constant 9.99999997E-7 : f32
    %13 = vector.broadcast %cst_8 : f32 to vector<32x1xf32>
    %14 = arith.addf %12, %13 : vector<32x1xf32>
    %15 = tpu.reciprocal %14 {approx = true} : vector<32x1xf32> -> vector<32x1xf32>
    %16 = vector.broadcast %15 : vector<32x1xf32> to vector<32x128xf32>
    %17 = arith.mulf %8, %16 : vector<32x128xf32>
    %18 = arith.truncf %17 : vector<32x128xf32> to vector<32x128xbf16>
    %c0_9 = arith.constant 0 : index
    %c0_10 = arith.constant 0 : index
    %19 = vector.load %arg5[%c0_9, %c0_10] : memref<128x128xbf16, #tpu.memory_space<vmem>>, vector<128x128xbf16>
    %cst_11 = arith.constant dense<0.000000e+00> : vector<32x128xf32>
    %20 = tpu.matmul %18, %19, %cst_11 {dimension_numbers = #tpu.dot_dimension_numbers<[1], [0], [0], [1], [0, 0, 1, 1], [], []>} : vector<32x128xbf16>, vector<128x128xbf16>, vector<32x128xf32> -> vector<32x128xf32>
    %c0_12 = arith.constant 0 : index
    %c0_13 = arith.constant 0 : index
    %21 = vector.load %arg6[%c0_12, %c0_13] : memref<32x128xf32, #tpu.memory_space<vmem>>, vector<32x128xf32>
    tpu.vector_store %arg6[%c0_12, %c0_13], %20 {strides = array<i32>} : memref<32x128xf32, #tpu.memory_space<vmem>>, vector<32x128xf32>,
    return
  }
  func.func @transform_0(%arg0: i32) -> (i32, i32) {
    %c0_i32 = arith.constant 0 : i32
    %c0_i32_0 = arith.constant 0 : i32
    return %arg0, %c0_i32 : i32, i32
  }
  func.func @transform_1(%arg0: i32) -> (i32, i32) {
    %c0_i32 = arith.constant 0 : i32
    %c0_i32_0 = arith.constant 0 : i32
    %c0_i32_1 = arith.constant 0 : i32
    return %c0_i32, %c0_i32_0 : i32, i32
  }
  func.func @transform_2(%arg0: i32) -> (i32, i32) {
    %c0_i32 = arith.constant 0 : i32
    %c0_i32_0 = arith.constant 0 : i32
    return %arg0, %c0_i32 : i32, i32
  }
  func.func @transform_3(%arg0: i32) -> (i32, i32) {
    %c0_i32 = arith.constant 0 : i32
    %c0_i32_0 = arith.constant 0 : i32
    %c0_i32_1 = arith.constant 0 : i32
    return %c0_i32, %c0_i32_0 : i32, i32
  }
  func.func @transform_4(%arg0: i32) -> (i32, i32) {
    %c0_i32 = arith.constant 0 : i32
    %c0_i32_0 = arith.constant 0 : i32
    %c0_i32_1 = arith.constant 0 : i32
    return %c0_i32, %c0_i32_0 : i32, i32
  }
  func.func @transform_5(%arg0: i32) -> (i32, i32) {
    %c0_i32 = arith.constant 0 : i32
    %c0_i32_0 = arith.constant 0 : i32
    return %arg0, %c0_i32 : i32, i32
  }
}

</mosaic_0001>

<bundles_post_ra>
// kernel: onlinehd_scores.3
= control target key start
LH: loop header
LB: loop body
LE: loop exit
PB: predicated region body
PF: predicated region fallthrough
CT: control target
= control target key end

     0   :  { %s732_s18 = smov 0   ;;  %s816_s0 = inlined_call_operand.vmem [shape: bf16[96,33], index: 0, kind: input, shape index: {}]   ;;  %s817_s1 = inlined_call_operand.vmem [shape: bf16[33,128], index: 1, kind: input, shape index: {}]   ;;  %s818_s2 = inlined_call_operand.vmem [shape: f32[96,1], index: 2, kind: input, shape index: {}]   ;;  %s819_s3 = inlined_call_operand.vmem [shape: f32[1,128], index: 3, kind: input, shape index: {}]   ;;  %s820_s4 = inlined_call_operand.vmem [shape: bf16[128,128], index: 4, kind: input, shape index: {}]   ;;  %s821_s5 = inlined_call_operand.vmem [shape: f32[96,128], index: 5, kind: output, shape index: {}]  }
   0x1 LB: > { %s582_s19 = sadd.s32 4294967295, %s699_s18   ;;  %p586_p0 = scmp.ge.s32.totalorder %s699_s18, 1  ;;  %s699_s18 = sphi %s732_s18, %s15_s18  }
   0x2   : > { %p199_p1 = scmp.lt.s32.totalorder %s699_s18, 4 }
   0x4   : > { %p200_p2 = pnand %p586_p0, %p199_p1 }
   0x5   : > { %s587_s22 = sshll.u32 (!%p200_p2), %s582_s19, 2 }
   0x6   : > { %203 = sbr.rel (%p200_p2) target bundleno = 476 (0x1dc), region = 40  ;;  %p233_p3 = scmp.lt.s32.totalorder (!%p200_p2), %s587_s22, 11 }
   0xb   : > { %v259_v0 = vld [vmem:[%s817_s1 + $0x10] sm:$0x1]  ;;  %vm292_vm0 = vcmask 1040384   ;;  %v701_v2 = vmov 0   ;;  %s823_s22 = smov (!%p233_p3, %s587_s22), 11  ;;  %v648_v6 = vld [vmem:[%s817_s1 + $0x8] sm:$0xff] }
   0xc   : > { %v279_v1 = vunpack.c.l.b16 %v259_v0  ;;  %675 = vset.pattern.permute.xlu1 %v701_v2  ;;  %674 = vset.pattern.permute.xlu0 %v701_v2  ;;  %v294_v3 = vsel %vm292_vm0, 65535, %v701_v2  ;;  %s590_s23 = sshll.u32 %s823_s22, 3  ;;  %s588_s29 = sshll.u32 %s823_s22, 2  ;;  %v647_v9 = vld [vmem:[%s817_s1] sm:$0xff]  ;;  %vm285_vm1 = vcmask 269312   ;;  %v656_v35 = vld [vmem:[%s820_s4 + $0x38] sm:$0xff] }
   0xd   : > { %s242_s28 = scalar_lea.vmem %s818_s2, %s590_s23  ;;  %s236_s9 = scalar_lea.vmem %s816_s0, %s588_s29  ;;  %v676_v15 = vld [vmem:[%s819_s3] ss:$0 sm:$0xff]  ;;  %491 = vmatpush.bf16.msra.mxu1 %v656_v35  ;;  %657 = vmatpush.bf16.msra.mxu2 %v656_v35  ;;  %v655_v36 = vld [vmem:[%s820_s4 + $0x30] sm:$0xff]  ;;  %v654_v37 = vld [vmem:[%s820_s4 + $0x28] sm:$0xff] }
   0xe   : > { %v282_v4 = vpack.c.b16 %v279_v1, %v279_v1  ;;  %v317_v7 = vld [vmem:[%s242_s28] sm:$0xff]  ;;  %v319_v8 = vld [vmem:[%s242_s28 + $0x10] sm:$0xff]  ;;  %v318_v11 = vld [vmem:[%s242_s28 + $0x8] sm:$0xff]  ;;  %s248_s8 = scalar_lea.vmem %s821_s5, %s590_s23 }
   0xf   : > { %323 = vperm.xlu1 %675, %v317_v7   ;;  %333 = vperm.xlu0 %674, %v319_v8   ;;  %v645_v10 = vld [vmem:[%s236_s9] sm:$0xff]  ;;  %v320_v12 = vld [vmem:[%s242_s28 + $0x18] sm:$0xff]  ;;  %v646_v13 = vld [vmem:[%s236_s9 + $0x8] sm:$0xff] }
  0x10   : > { %v296_v5 = vand.u32 %v294_v3, %v282_v4  ;;  %v653_v38 = vld [vmem:[%s820_s4 + $0x20] sm:$0xff]  ;;  %v652_v39 = vld [vmem:[%s820_s4 + $0x18] sm:$0xff]  ;;  %v651_v40 = vld [vmem:[%s820_s4 + $0x10] sm:$0xff] }
  0x11   : > { %492 = vmatpush.bf16.msra.mxu1 %v655_v36  ;;  %658 = vmatpush.bf16.msra.mxu2 %v655_v36  ;;  %v650_v42 = vld [vmem:[%s820_s4 + $0x8] sm:$0xff]  ;;  %v649_v43 = vld [vmem:[%s820_s4] sm:$0xff] }
  0x12   : > { %303 = vmatpush.bf16.msra.mxu0 %v296_v5 }
  0x15   : > { %493 = vmatpush.bf16.msra.mxu1 %v654_v37  ;;  %659 = vmatpush.bf16.msra.mxu2 %v654_v37 }
  0x16   : > { %304 = vmatpush.bf16.msra.mxu0 %v648_v6 }
  0x17   : > { %328 = vperm.xlu1 %675, %v318_v11   ;;  %338 = vperm.xlu0 %674, %v320_v12  }
  0x19   : > { %494 = vmatpush.bf16.msra.mxu1 %v653_v38  ;;  %660 = vmatpush.bf16.msra.mxu2 %v653_v38 }
  0x1a   : > { %305 = vmatpush.bf16.msra.mxu0 %v647_v9 }
  0x1d   : > { %609 = vmatmul.msk.bf16.vlgmr.msra.gmra.mxu0 %vm285_vm1, %v645_v10  ;;  %495 = vmatpush.bf16.msra.mxu1 %v652_v39 }
  0x1e   : > { %661 = vmatpush.bf16.msra.mxu2 %v652_v39 }
  0x21   : > { %496 = vmatpush.bf16.msra.mxu1 %v651_v40 }
  0x22   : > { %662 = vmatpush.bf16.msra.mxu2 %v651_v40 }
  0x25   : > { %497 = vmatpush.bf16.msra.mxu1 %v650_v42 }
  0x26   : > { %663 = vmatpush.bf16.msra.mxu2 %v650_v42 }
  0x29   : > { %498 = vmatpush.bf16.msra.mxu1 %v649_v43 }
  0x2a   : > { %664 = vmatpush.bf16.msra.mxu2 %v649_v43 }
  0x2d   : > { %610 = vmatmul.msk.bf16.gmra.mxu0 %vm285_vm1, %v646_v13 }
  0x81   : > { %v324_v14 = vpop.permute.xlu1 %323  ;;  %v334_v25 = vpop.permute.xlu0 %333 }
  0x89   : > { %v329_v20 = vpop.permute.xlu1 %328  ;;  %v339_v30 = vpop.permute.xlu0 %338 }
  0x9a   : > { %v307_v16 = vpop.f32.mrf.mxu0 }
  0x9b   : > { %v341_v17 = vmul.f32 %v324_v14, %v307_v16 }
  0x9d   : > { %v764_v18 = vsub.f32 %v341_v17, %v676_v15 }
  0x9f   : > { %v353_v19 = vmul.f32 %v764_v18, %v764_v18 }
  0xa1   : > { %357 = vadd.xlane.f32.xlu0 %v353_v19 }
  0xa2   : > { %v309_v21 = vpop.f32.mrf.mxu0 }
  0xa3   : > { %v342_v22 = vmul.f32 %v329_v20, %v309_v21 }
  0xa5   : > { %v768_v23 = vsub.f32 %v342_v22, %v676_v15 }
  0xa7   : > { %v354_v24 = vmul.f32 %v768_v23, %v768_v23 }
  0xa9   : > { %359 = vadd.xlane.f32.xlu1 %v354_v24 }
  0xaa   : > { %v312_v26 = vpop.f32.mrf.mxu0 }
  0xab   : > { %v343_v27 = vmul.f32 %v334_v25, %v312_v26 }
  0xad   : > { %v772_v28 = vsub.f32 %v343_v27, %v676_v15 }
  0xaf   : > { %v355_v29 = vmul.f32 %v772_v28, %v772_v28 }
  0xb1   : > { %361 = vadd.xlane.f32.xlu2 %v355_v29 }
  0xb2   : > { %v314_v31 = vpop.f32.mrf.mxu0 }
  0xb3   : > { %v344_v32 = vmul.f32 %v339_v30, %v314_v31 }
  0xb5   : > { %v776_v33 = vsub.f32 %v344_v32, %v676_v15 }
  0xb7   : > { %v356_v34 = vmul.f32 %v776_v33, %v776_v33 }
  0xb9   : > { %363 = vadd.xlane.f32.xlu2 %v356_v34 }
 0x114   : > { %v358_v41 = vpop.xlane.xlu0 %357 }
 0x115   : > { %677 = vrsqrt.f32 %v358_v41  ;;  %vm372_vm2 = vcmp.eq.f32.partialorder %v358_v41, inf  ;;  %v375_v58 = vand.u32 2147483648, %v358_v41  ;;  %vm374_vm3 = vcmp.eq.f32.partialorder %v358_v41, 0.0 }
 0x11b   : > { %v678_v44 = vpop.eup %677 }
 0x11c   : > { %v366_v45 = vmul.f32 %v678_v44, %v358_v41  ;;  %v360_v46 = vpop.xlane.xlu1 %359 }
 0x11d   : > { %679 = vrsqrt.f32 %v360_v46  ;;  %vm384_vm4 = vcmp.eq.f32.partialorder %v360_v46, inf  ;;  %v387_v4 = vand.u32 2147483648, %v360_v46  ;;  %vm386_vm5 = vcmp.eq.f32.partialorder %v360_v46, 0.0 }
 0x11e   : > { %v367_v47 = vmul.f32 %v678_v44, %v366_v45 }
 0x120   : > { %v368_v48 = vmul.f32 0.5, %v367_v47 }
 0x122   : > { %v369_v49 = vsub.f32 1.5, %v368_v48 }
 0x123   : > { %v680_v50 = vpop.eup %679 }
 0x124   : > { %v370_v51 = vmul.f32 %v678_v44, %v369_v49  ;;  %v378_v52 = vmul.f32 %v680_v50, %v360_v46  ;;  %v362_v53 = vpop.xlane.xlu2 %361 }
 0x125   : > { %681 = vrsqrt.f32 %v362_v53  ;;  %vm396_vm6 = vcmp.eq.f32.partialorder %v362_v53, inf  ;;  %v399_v19 = vand.u32 2147483648, %v362_v53  ;;  %vm398_vm7 = vcmp.eq.f32.partialorder %v362_v53, 0.0 }
 0x126   : > { %v371_v54 = vmul.f32 %v370_v51, %v358_v41  ;;  %v379_v55 = vmul.f32 %v680_v50, %v378_v52 }
 0x128   : > { %v373_v56 = vsel %vm372_vm2, %v358_v41, %v371_v54  ;;  %v380_v57 = vmul.f32 0.5, %v379_v55 }
 0x129   : > { %v376_v61 = vsel %vm374_vm3, %v375_v58, %v373_v56 }
 0x12a   : > { %v381_v59 = vsub.f32 1.5, %v380_v57  ;;  %v413_v3 = vadd.f32 1e-06, %v376_v61 }
 0x12b   : > { %v682_v60 = vpop.eup %681 }
 0x12c   : > { %v382_v62 = vmul.f32 %v680_v50, %v381_v59  ;;  %v390_v63 = vmul.f32 %v682_v60, %v362_v53  ;;  %v364_v0 = vpop.xlane.xlu2 %363 }
 0x12d   : > { %683 = vrsqrt.f32 %v364_v0  ;;  %vm408_vm8 = vcmp.eq.f32.partialorder %v364_v0, inf  ;;  %v411_v31 = vand.u32 2147483648, %v364_v0  ;;  %vm410_vm9 = vcmp.eq.f32.partialorder %v364_v0, 0.0 }
 0x12e   : > { %v383_v1 = vmul.f32 %v382_v62, %v360_v46  ;;  %v391_v2 = vmul.f32 %v682_v60, %v390_v63  ;;  %685 = vrcp.f32 %v413_v3 }
 0x130   : > { %v385_v5 = vsel %vm384_vm4, %v360_v46, %v383_v1  ;;  %v392_v6 = vmul.f32 0.5, %v391_v2 }
 0x131   : > { %v388_v7 = vsel %vm386_vm5, %v387_v4, %v385_v5 }
 0x132   : > { %v393_v8 = vsub.f32 1.5, %v392_v6  ;;  %v414_v9 = vadd.f32 1e-06, %v388_v7 }
 0x133   : > { %v684_v10 = vpop.eup %683 }
 0x134   : > { %v394_v11 = vmul.f32 %v682_v60, %v393_v8  ;;  %v402_v12 = vmul.f32 %v684_v10, %v364_v0  ;;  %687 = vrcp.f32 %v414_v9  ;;  %v686_v15 = vpop.eup %685 }
 0x135   : > { %v421_v22 = vmul.f32 %v686_v15, %v764_v18 }
 0x136   : > { %v395_v13 = vmul.f32 %v394_v11, %v362_v53  ;;  %v403_v14 = vmul.f32 %v684_v10, %v402_v12 }
 0x138   : > { %v404_v16 = vmul.f32 0.5, %v403_v14  ;;  %v397_v17 = vsel %vm396_vm6, %v362_v53, %v395_v13 }
 0x139   : > { %v400_v25 = vsel %vm398_vm7, %v399_v19, %v397_v17 }
 0x13a   : > { %v688_v20 = vpop.eup %687  ;;  %v405_v21 = vsub.f32 1.5, %v404_v16  ;;  %v415_v30 = vadd.f32 1e-06, %v400_v25 }
 0x13b   : > { %v422_v24 = vmul.f32 %v688_v20, %v768_v23 }
 0x13c   : > { %v406_v26 = vmul.f32 %v684_v10, %v405_v21  ;;  %689 = vrcp.f32 %v415_v30 }
 0x13d   : > { %v425_v27 = vpack.c.bf16 %v422_v24, %v421_v22 }
 0x13e   : > { %v407_v29 = vmul.f32 %v406_v26, %v364_v0 }
 0x13f   : > { %499 = vmatmul.bf16.vlgmr.msra.gmra.mxu1 %v425_v27 }
 0x140   : > { %v409_v32 = vsel %vm408_vm8, %v364_v0, %v407_v29 }
 0x141   : > { %v412_v34 = vsel %vm410_vm9, %v411_v31, %v409_v32 }
 0x142   : > { %v416_v35 = vadd.f32 1e-06, %v412_v34  ;;  %v690_v36 = vpop.eup %689 }
 0x143   : > { %v423_v18 = vmul.f32 %v690_v36, %v772_v28 }
 0x144   : > { %691 = vrcp.f32 %v416_v35 }
 0x14a   : > { %v692_v37 = vpop.eup %691 }
 0x14b   : > { %v424_v23 = vmul.f32 %v692_v37, %v776_v33 }
 0x14d   : > { %v426_v38 = vpack.c.bf16 %v424_v23, %v423_v18 }
 0x14f   : > { %504 = vmatmul.bf16.vlgmr.msra.gmra.mxu2 %v426_v38 }
 0x1bc   : > { %v500_v39 = vpop.f32.mrf.mxu1 }
 0x1bd   : > { %510 = vst [vmem:[%s248_s8] sm:$0xff] %v500_v39 }
 0x1c4   : > { %v502_v40 = vpop.f32.mrf.mxu1 }
 0x1c5   : > { %511 = vst [vmem:[%s248_s8 + $0x8] sm:$0xff] %v502_v40 }
 0x1d2   : > { %v505_v41 = vpop.f32.mrf.mxu2 }
 0x1d3   : > { %512 = vst [vmem:[%s248_s8 + $0x10] sm:$0xff] %v505_v41 }
 0x1da   : > { %v507_v42 = vpop.f32.mrf.mxu2 }
 0x1db   : > { %513 = vst [vmem:[%s248_s8 + $0x18] sm:$0xff] %v507_v42 }
 0x1dc PF: > { %s15_s18 = sadd.s32 1, %s699_s18  }
 0x1dd   : > { %p12_p4 = scmp.ge.s32.totalorder %s15_s18, 5  }
 0x1df   :  { %14 = sbr.rel (!%p12_p4) target bundleno = 1 (0x1), region = 73 }

// kernel: onlinehd_scores.2
= control target key start
LH: loop header
LB: loop body
LE: loop exit
PB: predicated region body
PF: predicated region fallthrough
CT: control target
= control target key end

     0   :  { %s591_s12 = smov 0   ;;  %s660_s0 = inlined_call_operand.vmem [shape: bf16[96,33], index: 0, kind: input, shape index: {}]   ;;  %s661_s1 = inlined_call_operand.vmem [shape: bf16[33,128], index: 1, kind: input, shape index: {}]   ;;  %s662_s2 = inlined_call_operand.vmem [shape: f32[24,128], index: 2, kind: output, shape index: {0}]   ;;  %s663_s3 = inlined_call_operand.vmem [shape: f32[96,1], index: 3, kind: output, shape index: {1}]  }
   0x1 LB: > { %s597_s13 = sadd.s32 4294967295, %s567_s12   ;;  %p484_p0 = scmp.ge.s32.totalorder %s567_s12, 1  ;;  %s567_s12 = sphi %s591_s12, %s14_s12  }
   0x2   : > { %p141_p1 = scmp.lt.s32.totalorder %s567_s12, 4 }
   0x4   : > { %p142_p2 = pnand %p484_p0, %p141_p1 }
   0x5   : > { %s485_s16 = sshll.u32 (!%p142_p2), %s597_s13, 2  ;;  %s508_s29 = sshll.u32 (!%p142_p2), %s597_s13, 5 }
   0x6   : > { %145 = sbr.rel (%p142_p2) target bundleno = 483 (0x1e3), region = 28  ;;  %p170_p3 = scmp.lt.s32.totalorder (!%p142_p2), %s485_s16, 11 }
   0x7   : > { %p175_p4 = scmp.lt.s32.totalorder (!%p142_p2), %s597_s13, 2 }
   0xb   : > { %v194_v0 = vld [vmem:[%s661_s1 + $0x10] sm:$0x1]  ;;  %vm227_vm0 = vcmask 1040384   ;;  %v569_v2 = vmov 0   ;;  %s665_s16 = smov (!%p170_p3, %s485_s16), 11  ;;  %v515_v6 = vld [vmem:[%s661_s1 + $0x8] sm:$0xff] }
   0xc   : > { %v214_v1 = vunpack.c.l.b16 %v194_v0  ;;  %v229_v3 = vsel %vm227_vm0, 65535, %v569_v2  ;;  %s486_s19 = sshll.u32 %s665_s16, 2  ;;  %v514_v7 = vld [vmem:[%s661_s1] sm:$0xff]  ;;  %vm220_vm1 = vcmask 269312   ;;  %s489_s25 = sshll.u32 %s665_s16, 3  ;;  %vm348_vm10 = vcmask 7168  }
   0xd   : > { %s173_s24 = scalar_lea.vmem %s660_s0, %s486_s19  ;;  %s183_s28 = scalar_lea.vmem %s663_s3, %s489_s25  ;;  %vm368_vm14 = vcmask 261120  }
   0xe   : > { %v217_v4 = vpack.c.b16 %v214_v1, %v214_v1  ;;  %v512_v8 = vld [vmem:[%s173_s24] sm:$0xff]  ;;  %v513_v9 = vld [vmem:[%s173_s24 + $0x8] sm:$0xff]  ;;  %s667_s13 = smov (!%p175_p4, %s597_s13), 2 }
   0xf   : > { %s487_s30 = sshll.u32 %s667_s13, 3 }
  0x10   : > { %v231_v5 = vand.u32 %v229_v3, %v217_v4  ;;  %s178_s6 = scalar_lea.vmem %s662_s2, %s487_s30 }
  0x12   : > { %238 = vmatpush.bf16.msra.mxu0 %v231_v5  ;;  %516 = vmatpush.bf16.msra.mxu2 %v231_v5 }
  0x16   : > { %239 = vmatpush.bf16.msra.mxu0 %v515_v6  ;;  %517 = vmatpush.bf16.msra.mxu2 %v515_v6 }
  0x1a   : > { %240 = vmatpush.bf16.msra.mxu0 %v514_v7  ;;  %518 = vmatpush.bf16.msra.mxu2 %v514_v7 }
  0x1d   : > { %506 = vmatmul.msk.bf16.vlgmr.msra.gmra.mxu0 %vm220_vm1, %v512_v8  ;;  %507 = vmatmul.msk.bf16.vlgmr.msra.gmra.mxu2 %vm220_vm1, %v513_v9 }
  0x9a   : > { %v617_v10 = vpop.f32.mrf.mxu0 }
  0x9b   : > { %v252_v11 = vand.u32 2147483647, %v617_v10 }
  0x9d   : > { %529 = vrsqrt.f32 %v252_v11  ;;  %vm263_vm4 = vcmp.eq.f32.partialorder %v252_v11, inf  ;;  %v266_v51 = vand.u32 2147483648, %v252_v11  ;;  %vm265_vm7 = vcmp.eq.f32.partialorder %v252_v11, 0.0 }
  0xa0   : > { %v620_v12 = vpop.f32.mrf.mxu2 }
  0xa1   : > { %v623_v13 = vand.u32 2147483647, %v620_v12 }
  0xa2   : > { %v625_v14 = vpop.f32.mrf.mxu0 }
  0xa3   : > { %v530_v15 = vpop.eup %529  ;;  %v253_v16 = vand.u32 2147483647, %v625_v14  ;;  %531 = vrsqrt.f32 %v623_v13  ;;  %vm287_vm8 = vcmp.eq.f32.partialorder %v623_v13, inf  ;;  %v290_v59 = vand.u32 2147483648, %v623_v13 }
  0xa4   : > { %v257_v17 = vmul.f32 %v530_v15, %v252_v11  ;;  %vm289_vm9 = vcmp.eq.f32.partialorder %v623_v13, 0.0 }
  0xa5   : > { %533 = vrsqrt.f32 %v253_v16  ;;  %vm275_vm2 = vcmp.eq.f32.partialorder %v253_v16, inf  ;;  %v278_v40 = vand.u32 2147483648, %v253_v16  ;;  %vm277_vm3 = vcmp.eq.f32.partialorder %v253_v16, 0.0 }
  0xa6   : > { %v258_v19 = vmul.f32 %v530_v15, %v257_v17 }
  0xa8   : > { %v629_v18 = vpop.f32.mrf.mxu2  ;;  %v259_v25 = vmul.f32 0.5, %v258_v19 }
  0xa9   : > { %v532_v20 = vpop.eup %531  ;;  %v255_v21 = vand.u32 2147483647, %v629_v18 }
  0xaa   : > { %v281_v22 = vmul.f32 %v532_v20, %v623_v13  ;;  %v260_v29 = vsub.f32 1.5, %v259_v25 }
  0xab   : > { %v534_v23 = vpop.eup %533  ;;  %535 = vrsqrt.f32 %v255_v21  ;;  %vm299_vm5 = vcmp.eq.f32.partialorder %v255_v21, inf  ;;  %v302_v50 = vand.u32 2147483648, %v255_v21  ;;  %vm301_vm6 = vcmp.eq.f32.partialorder %v255_v21, 0.0 }
  0xac   : > { %v269_v24 = vmul.f32 %v534_v23, %v253_v16  ;;  %v282_v27 = vmul.f32 %v532_v20, %v281_v22  ;;  %v261_v36 = vmul.f32 %v530_v15, %v260_v29 }
  0xae   : > { %v270_v26 = vmul.f32 %v534_v23, %v269_v24  ;;  %v283_v33 = vmul.f32 0.5, %v282_v27  ;;  %v262_v43 = vmul.f32 %v261_v36, %v252_v11 }
  0xb0   : > { %v271_v28 = vmul.f32 0.5, %v270_v26  ;;  %v284_v39 = vsub.f32 1.5, %v283_v33  ;;  %v264_v49 = vsel %vm263_vm4, %v252_v11, %v262_v43  ;;  %v357_v33 = vlaneseq }
  0xb1   : > { %v536_v30 = vpop.eup %535  ;;  %v267_v55 = vsel %vm265_vm7, %v266_v51, %v264_v49 }
  0xb2   : > { %v272_v31 = vsub.f32 1.5, %v271_v28  ;;  %v293_v32 = vmul.f32 %v536_v30, %v255_v21  ;;  %v285_v47 = vmul.f32 %v532_v20, %v284_v39  ;;  %v304_v57 = vmul.f32 %v267_v55, %v252_v11 }
  0xb4   : > { %v273_v34 = vmul.f32 %v534_v23, %v272_v31  ;;  %v294_v35 = vmul.f32 %v536_v30, %v293_v32  ;;  %v286_v53 = vmul.f32 %v285_v47, %v623_v13 }
  0xb6   : > { %v274_v37 = vmul.f32 %v273_v34, %v253_v16  ;;  %v295_v38 = vmul.f32 0.5, %v294_v35  ;;  %v288_v58 = vsel %vm287_vm8, %v623_v13, %v286_v53  ;;  %v360_v35 = vand.u32 127, %v357_v33 }
  0xb7   : > { %v291_v60 = vsel %vm289_vm9, %v290_v59, %v288_v58 }
  0xb8   : > { %v276_v41 = vsel %vm275_vm2, %v253_v16, %v274_v37  ;;  %v296_v42 = vsub.f32 1.5, %v295_v38  ;;  %v306_v61 = vmul.f32 %v291_v60, %v623_v13  ;;  %v363_v38 = vstv %s508_s29 }
  0xb9   : > { %v279_v44 = vsel %vm277_vm3, %v278_v40, %v276_v41  ;;  %v358_v41 = vshrl.u32 %v357_v33, 7 }
  0xba   : > { %v305_v45 = vmul.f32 %v279_v44, %v253_v16  ;;  %v297_v46 = vmul.f32 %v536_v30, %v296_v42  ;;  %v364_v42 = vadd.s32 %v363_v38, %v360_v35 }
  0xbb   : > { %vm361_vm11 = vcmp.eq.s32.totalorder %v358_v41, 0 }
  0xbc   : > { %310 = vadd.xlane.f32.xlu1 %v305_v45  ;;  %v298_v48 = vmul.f32 %v297_v46, %v255_v21  ;;  %vm365_vm12 = vcmp.lt.s32.totalorder %v364_v42, 80  ;;  %v570_v46 = vmov 0.0  }
  0xbd   : > { %vm366_vm13 = vmand %vm361_vm11, %vm365_vm12 }
  0xbe   : > { %v300_v52 = vsel %vm299_vm5, %v255_v21, %v298_v48  ;;  %v367_v47 = vsel %vm366_vm13, 1.0, %v570_v46 }
  0xbf   : > { %v303_v54 = vsel %vm301_vm6, %v302_v50, %v300_v52 }
  0xc0   : > { %v307_v56 = vmul.f32 %v303_v54, %v255_v21 }
  0xc2   : > { %314 = vadd.xlane.f32.xlu0 %v307_v56 }
  0xc4   : > { %308 = vadd.xlane.f32.xlu1 %v304_v57 }
  0xca   : > { %312 = vadd.xlane.f32.xlu0 %v306_v61 }
 0x12f   : > { %v311_v62 = vpop.xlane.xlu1 %310 }
 0x130   : > { %v317_v63 = vmax.f32 %v311_v62, 1e-30 }
 0x132   : > { %537 = vlog2.f32 %v317_v63 }
 0x135   : > { %v315_v0 = vpop.xlane.xlu0 %314 }
 0x136   : > { %v319_v1 = vmax.f32 %v315_v0, 1e-30 }
 0x137   : > { %v309_v2 = vpop.xlane.xlu1 %308 }
 0x138   : > { %v538_v3 = vpop.eup %537  ;;  %539 = vlog2.f32 %v319_v1  ;;  %v316_v4 = vmax.f32 %v309_v2, 1e-30 }
 0x139   : > { %v323_v5 = vmul.f32 0.6931472, %v538_v3 }
 0x13a   : > { %541 = vlog2.f32 %v316_v4 }
 0x13b   : > { %v329_v6 = vmul.f32 0.6666667, %v323_v5 }
 0x13d   : > { %v334_v7 = vmul.f32 1.442695, %v329_v6  ;;  %v313_v8 = vpop.xlane.xlu0 %312 }
 0x13e   : > { %v540_v9 = vpop.eup %539  ;;  %v318_v11 = vmax.f32 %v313_v8, 1e-30 }
 0x13f   : > { %543 = vpow2.f32 %v334_v7  ;;  %v327_v13 = vmul.f32 0.6931472, %v540_v9 }
 0x140   : > { %v542_v15 = vpop.eup %541  ;;  %545 = vlog2.f32 %v318_v11 }
 0x141   : > { %v331_v16 = vmul.f32 0.6666667, %v327_v13  ;;  %v321_v17 = vmul.f32 0.6931472, %v542_v15 }
 0x143   : > { %v338_v19 = vmul.f32 1.442695, %v331_v16  ;;  %v328_v20 = vmul.f32 0.6666667, %v321_v17 }
 0x145   : > { %v544_v21 = vpop.eup %543  ;;  %547 = vpow2.f32 %v338_v19  ;;  %v332_v22 = vmul.f32 1.442695, %v328_v20 }
 0x146   : > { %v546_v23 = vpop.eup %545  ;;  %v341_v24 = vadd.f32 1e-08, %v544_v21 }
 0x147   : > { %549 = vpow2.f32 %v332_v22  ;;  %v325_v25 = vmul.f32 0.6931472, %v546_v23 }
 0x148   : > { %551 = vrcp.f32 %v341_v24 }
 0x149   : > { %v330_v26 = vmul.f32 0.6666667, %v325_v25 }
 0x14b   : > { %v548_v27 = vpop.eup %547  ;;  %v336_v28 = vmul.f32 1.442695, %v330_v26 }
 0x14c   : > { %v343_v29 = vadd.f32 1e-08, %v548_v27 }
 0x14d   : > { %v550_v30 = vpop.eup %549  ;;  %553 = vpow2.f32 %v336_v28 }
 0x14e   : > { %v552_v31 = vpop.eup %551  ;;  %555 = vrcp.f32 %v343_v29  ;;  %v340_v32 = vadd.f32 1e-08, %v550_v30 }
 0x14f   : > { %350 = vst.msk [vmem:[%s183_s28 + $0x8] sm:$0xff] %vm348_vm10, %v552_v31 }
 0x150   : > { %557 = vrcp.f32 %v340_v32 }
 0x153   : > { %v554_v34 = vpop.eup %553 }
 0x154   : > { %v556_v36 = vpop.eup %555  ;;  %v342_v37 = vadd.f32 1e-08, %v554_v34 }
 0x155   : > { %352 = vst.msk [vmem:[%s183_s28 + $0x18] sm:$0xff] %vm348_vm10, %v556_v36  ;;  %v356_v39 = vmul.f32 %v556_v36, %v629_v18  ;;  %v354_v18 = vmul.f32 %v552_v31, %v625_v14 }
 0x156   : > { %v558_v40 = vpop.eup %557  ;;  %559 = vrcp.f32 %v342_v37 }
 0x157   : > { %349 = vst.msk [vmem:[%s183_s28] sm:$0xff] %vm348_vm10, %v558_v40  ;;  %384 = vmatpush.msra.mxu1 %v356_v39  ;;  %v353_v45 = vmul.f32 %v558_v40, %v617_v10 }
 0x15c   : > { %v560_v43 = vpop.eup %559 }
 0x15d   : > { %351 = vst.msk [vmem:[%s183_s28 + $0x10] sm:$0xff] %vm348_vm10, %v560_v43  ;;  %v355_v44 = vmul.f32 %v560_v43, %v620_v12 }
 0x15f   : > { %385 = vmatpush.msra.mxu1 %v355_v44 }
 0x161   : > { %386 = vmatpush.msra.mxu1 %v354_v18 }
 0x163   : > { %387 = vmatpush.msra.mxu1 %v353_v45 }
 0x164   : > { %509 = vmatmul.msk.f32.vlgmr.msra.gmra.mxu1 %vm368_vm14, %v367_v47 }
 0x1e1   : > { %v389_v12 = vpop.f32.mrf.mxu1 }
 0x1e2   : > { %392 = vst [vmem:[%s178_s6] sm:$0xff] %v389_v12 }
 0x1e3 PF: > { %s14_s12 = sadd.s32 1, %s567_s12  }
 0x1e4   : > { %p11_p5 = scmp.ge.s32.totalorder %s14_s12, 5  }
 0x1e6   :  { %13 = sbr.rel (!%p11_p5) target bundleno = 1 (0x1), region = 70 }

</bundles_post_ra>
